<compile_context>
chip_gen: v6e
topology: v6e:2x2x1
jax: 0.10.0
libtpu: 0.0.40
codegen_flags: <defaults>
</compile_context>

<pallas_src>
import functools

import jax
import jax.numpy as jnp
from jax.experimental import pallas as pl
from jax.experimental.pallas import tpu as pltpu


LANE = 128  # lane width / channel padding quantum


# ------------------------------ small helpers ------------------------------ #

def _round_up(x, m):
    return (x + m - 1) // m * m


def _pad2(x, rows, cols):
    return jnp.pad(x, ((0, rows - x.shape[0]), (0, cols - x.shape[1])))


def _vmem_capacity_bytes():
    """Physical VMEM per core (generation-aware), with a safe fallback."""
    try:
        info = pltpu.get_tpu_info()
        cap = getattr(info, "vmem_capacity_bytes", None)
        if cap:
            return int(cap)
    except Exception:
        pass
    return 64 * 1024 * 1024  # conservative (v7x per-core)


_VMEM_CAP = _vmem_capacity_bytes()
# Scoped VMEM we ask the compiler for: 48 MiB on v7x (64 MiB physical),
# 96 MiB on v5e/v6e (128 MiB physical).
VMEM_LIMIT = max(32 * 1024 * 1024, min(int(_VMEM_CAP * 3 // 4), 96 * 1024 * 1024))
# Working-set budget used when picking tiles (leave headroom under the limit).
_WS_BUDGET = int(VMEM_LIMIT * 0.8)


def _pick_feat_tile(n_p, c_in, c_out, budget):
    """Largest row tile for H = X @ W that fits the VMEM budget."""
    for tm in (2048, 1024, 512, 256, 128):
        if n_p % tm:
            continue
        ws = (2 * tm * c_in * 2        # X tile, double-buffered bf16
              + 2 * c_in * c_out * 2   # W (constant index), budgeted dbuf
              + 2 * tm * c_out * 2)    # H out tile, double-buffered bf16
        if ws <= budget:
            return tm
    return 128


def _pick_agg_tiles(n_p, c_out, out_bytes, budget):
    """Row/reduction tiles for out = A @ H + b; decide if H is VMEM-resident."""
    tn = c_out  # full output width -> single pass over A (no j grid axis)
    h_resident = (2 * n_p * tn * 2) <= budget // 2
    h_bytes = 2 * n_p * tn * 2 if h_resident else 0
    for tm in (1024, 512, 256, 128):
        if n_p % tm:
            continue
        for tk in (2048, 1024, 512, 256, 128):
            if n_p % tk:
                continue
            ws = (2 * tm * tk * 2                                   # A tiles (dbuf)
                  + (h_bytes if h_resident else 2 * tk * tn * 2)    # H
                  + 2 * tm * tn * out_bytes                         # out tiles (dbuf)
                  + tm * tn * 4                                     # f32 accumulator
                  + 2 * tn * 4)                                     # bias
            if ws <= budget:
                return tm, tk, h_resident
    return 128, 128, h_resident


# ------------------------------ Pallas kernels ----------------------------- #

def _feature_kernel(x_ref, w_ref, h_ref):
    """H tile = X tile @ W (full W resident in VMEM)."""
    h_ref[...] = jnp.dot(
        x_ref[...], w_ref[...], preferred_element_type=jnp.float32
    ).astype(h_ref.dtype)


def _agg_kernel(a_ref, h_ref, b_ref, o_ref, acc_ref, *, apply_relu, tk,
                h_resident):
    """out tile = sum_k A[i,k] @ H[k,:]  (+ bias, optional ReLU on finalize).

    If `h_resident`, h_ref holds the full (n_p, c_out) H in VMEM and is sliced
    along the reduction axis here; otherwise h_ref is the (tk, c_out) block.
    """
    k = pl.program_id(1)

    @pl.when(k == 0)
    def _():
        acc_ref[...] = jnp.zeros_like(acc_ref)

    if h_resident:
        start = pl.multiple_of(k * tk, tk)
        h_blk = h_ref[pl.ds(start, tk), :]
    else:
        h_blk = h_ref[...]

    acc_ref[...] += jnp.dot(a_ref[...], h_blk,
                            preferred_element_type=jnp.float32)

    @pl.when(k == pl.num_programs(1) - 1)
    def _():
        # Bias/ReLU run on the f32 accumulator (no bf16 VPU dependence).
        # Note: padded node rows receive bias too; harmless because A's padded
        # columns are zero and the final output is sliced to real nodes.
        out = acc_ref[...] + b_ref[...]
        if apply_relu:
            out = jnp.maximum(out, 0.0)
        o_ref[...] = out.astype(o_ref.dtype)


# ------------------------------ layer wrapper ------------------------------ #

def gcn_layer(a_p, x_p, w_p, b_p, *, apply_relu, out_dtype):
    """One GCN layer on padded, bf16 inputs.

    a_p: [Np, Np]    bf16 normalized adjacency (padded)
    x_p: [Np, Cin]   bf16 node features        (padded)
    w_p: [Cin, Cout] bf16 weight               (padded)
    b_p: [1, Cout]   f32 bias                  (padded)
    returns [Np, Cout] in `out_dtype`
    """
    n_p = a_p.shape[0]
    c_in, c_out = w_p.shape
    out_bytes = jnp.dtype(out_dtype).itemsize

    # ---- phase 1: H = X @ W (feature transform, FLOP-optimal ordering) ---- #
    tm_f = _pick_feat_tile(n_p, c_in, c_out, _WS_BUDGET)
    h = pl.pallas_call(
        _feature_kernel,
        out_shape=jax.ShapeDtypeStruct((n_p, c_out), jnp.bfloat16),
        grid_spec=pltpu.PrefetchScalarGridSpec(
            num_scalar_prefetch=0,
            grid=(n_p // tm_f,),
            in_specs=[pl.BlockSpec((tm_f, c_in), lambda i: (i, 0)),
                      pl.BlockSpec((c_in, c_out), lambda i: (0, 0))],
            out_specs=pl.BlockSpec((tm_f, c_out), lambda i: (i, 0))),
        compiler_params=pltpu.CompilerParams(
            dimension_semantics=("parallel",),
            vmem_limit_bytes=VMEM_LIMIT),
        cost_estimate=pl.CostEstimate(
            flops=2 * n_p * c_in * c_out,
            transcendentals=0,
            bytes_accessed=(n_p * c_in + c_in * c_out + n_p * c_out) * 2),
    )(x_p, w_p)

    # ---- phase 2: out = A_hat @ H + b (single A pass, resident H) ---------- #
    tm, tk, h_resident = _pick_agg_tiles(n_p, c_out, out_bytes, _WS_BUDGET)

    if h_resident:
        # Full H resident in VMEM (constant block index -> DMA'd once),
        # sliced in-kernel along the reduction axis.
        h_spec = pl.BlockSpec((n_p, c_out), lambda i, k: (0, 0))
        h_read_bytes = n_p * c_out * 2
    else:
        # Fallback for very large graphs: stream H blocks (re-read per row tile).
        h_spec = pl.BlockSpec((tk, c_out), lambda i, k: (k, 0))
        h_read_bytes = (n_p // tm) * n_p * c_out * 2

    kernel = functools.partial(_agg_kernel, apply_relu=apply_relu, tk=tk,
                               h_resident=h_resident)
    out = pl.pallas_call(
        kernel,
        out_shape=jax.ShapeDtypeStruct((n_p, c_out), out_dtype),
        grid_spec=pltpu.PrefetchScalarGridSpec(
            num_scalar_prefetch=0,
            grid=(n_p // tm, n_p // tk),
            in_specs=[pl.BlockSpec((tm, tk), lambda i, k: (i, k)),
                      h_spec,
                      pl.BlockSpec((1, c_out), lambda i, k: (0, 0))],
            out_specs=pl.BlockSpec((tm, c_out), lambda i, k: (i, 0)),
            scratch_shapes=[pltpu.VMEM((tm, c_out), jnp.float32)]),
        compiler_params=pltpu.CompilerParams(
            dimension_semantics=("parallel", "arbitrary"),
            vmem_limit_bytes=VMEM_LIMIT),
        cost_estimate=pl.CostEstimate(
            flops=2 * n_p * n_p * c_out,
            transcendentals=0,
            bytes_accessed=(n_p * n_p * 2            # A: exactly one pass
                            + h_read_bytes           # H
                            + c_out * 4              # bias
                            + n_p * c_out * out_bytes)),
    )(a_p, h, b_p)
    return out


# ------------------------------- glue (JAX) -------------------------------- #

def build_norm_adj_padded(edge_index, num_nodes, n_padded):
    """GCN symmetric normalization D^-1/2 (A + I_missing) D^-1/2, built
    directly at padded size (padded rows/cols stay exactly zero).

    Duplicate edges scatter-ADD (like PyG's GCNConv); self-loops are only
    added to real nodes that do not already have one.
    """
    src = edge_index[0]
    dst = edge_index[1]
    a = jnp.zeros((n_padded, n_padded), jnp.float32)
    # message flows src -> dst: row = target node, col = source node
    a = a.at[dst, src].add(1.0)
    diag = jnp.diagonal(a)
    real = jnp.arange(n_padded) < num_nodes
    a = a + jnp.diag(jnp.where((diag == 0.0) & real, 1.0, 0.0))
    deg = a.sum(axis=1)
    d_inv_sqrt = jnp.where(deg > 0, jax.lax.rsqrt(deg), 0.0)
    return d_inv_sqrt[:, None] * a * d_inv_sqrt[None, :]


def glorot(key, shape):
    fan_in, fan_out = shape
    limit = jnp.sqrt(6.0 / (fan_in + fan_out))
    return jax.random.uniform(key, shape, jnp.float32, -limit, limit)


class GNNBasePallas:
    """GCN-flavored GNNBase. dropout=0.0 -> dropout is the identity."""

    def __init__(self, in_channels, hidden_channels, out_channels, num_layers,
                 dropout=0.0, key=None):
        assert num_layers >= 2
        self.dropout = dropout
        self.out_channels = out_channels
        dims = ([in_channels]
                + [hidden_channels] * (num_layers - 1)
                + [out_channels])
        self.dims_padded = [_round_up(d, LANE) for d in dims]

        # Pad + cast weights/biases ONCE at init (hoisted off the call path).
        self.params = []
        keys = jax.random.split(key, num_layers)
        for i in range(num_layers):
            w = glorot(keys[i], (dims[i], dims[i + 1]))
            w_p = _pad2(w, self.dims_padded[i],
                        self.dims_padded[i + 1]).astype(jnp.bfloat16)
            b_p = jnp.zeros((1, self.dims_padded[i + 1]), jnp.float32)
            self.params.append((w_p, b_p))

        # Per-graph cache of the padded bf16 normalized adjacency.
        self._adj_cache = {}

    def precompute_adjacency(self, edge_index, num_nodes):
        n_p = _round_up(num_nodes, LANE)
        a = build_norm_adj_padded(edge_index, num_nodes, n_p)
        return a.astype(jnp.bfloat16)

    def __call__(self, x, edge_index, a_p=None):
        n = x.shape[0]
        n_p = _round_up(n, LANE)

        if a_p is None:
            cache_key = (id(edge_index), n)
            cached = self._adj_cache.get(cache_key)
            if cached is not None and cached[0] is edge_index:
                a_p = cached[1]
            else:
                a_p = self.precompute_adjacency(edge_index, n)
                self._adj_cache = {cache_key: (edge_index, a_p)}

        h = _pad2(x.astype(jnp.float32), n_p,
                  self.dims_padded[0]).astype(jnp.bfloat16)

        for i, (w_p, b_p) in enumerate(self.params):
            last = i == len(self.params) - 1
            h = gcn_layer(a_p, h, w_p, b_p,
                          apply_relu=not last,
                          out_dtype=jnp.float32 if last else jnp.bfloat16)
            # dropout with p=0.0 is the identity; nothing to do

        return h[:n, :self.out_channels]


# ---------------------------------- main ----------------------------------- #

if __name__ == "__main__":
    key = jax.random.PRNGKey(0)
    k_x, k_model = jax.random.split(key)

    N = 16              # number of nodes
    IN_C = 8            # input features
    HID_C = 32          # hidden features
    OUT_C = 16          # output features
    NUM_LAYERS = 3

    # Node features
    x = jax.random.normal(k_x, (N, IN_C), jnp.float32)

    # Ring graph, bidirectional edges: edge_index shape [2, 2N]
    src = jnp.arange(N, dtype=jnp.int32)
    dst = (src + 1) % N
    edge_index = jnp.stack(
        [jnp.concatenate([src, dst]), jnp.concatenate([dst, src])], axis=0)

    model = GNNBasePallas(IN_C, HID_C, OUT_C, NUM_LAYERS, dropout=0.0,
                          key=k_model)
    out = model(x, edge_index)
    out = jax.block_until_ready(out)

    assert out.shape == (N, OUT_C), out.shape
    assert jnp.isfinite(out).all()
    print("KERNEL_OK")
</pallas_src>

<mosaic_0001>
module attributes {stable_mosaic.version = 11 : i64} {
  func.func @_feature_kernel(%arg0: i32, %arg1: memref<128x128xbf16, #tpu.memory_space<vmem>>, %arg2: memref<128x128xbf16, #tpu.memory_space<vmem>>, %arg3: memref<128x128xbf16, #tpu.memory_space<vmem>>) attributes {dimension_semantics = [#tpu.dimension_semantics<parallel>], iteration_bounds = array<i64: 1>, scalar_prefetch = 0 : i64, scratch_operands = 0 : i64, tpu.core_type = #tpu.core_type<tc>, window_params = [{transform_indices = @transform_0, window_bounds = array<i64: 128, 128>}, {pipeline_mode = #tpu.pipeline_mode<synchronous>, transform_indices = @transform_1, window_bounds = array<i64: 128, 128>}, {transform_indices = @transform_2, window_bounds = array<i64: 128, 128>}]} {
    %c0 = arith.constant 0 : index
    %c0_0 = arith.constant 0 : index
    %0 = vector.load %arg1[%c0, %c0_0] : memref<128x128xbf16, #tpu.memory_space<vmem>>, vector<128x128xbf16>
    %c0_1 = arith.constant 0 : index
    %c0_2 = arith.constant 0 : index
    %1 = vector.load %arg2[%c0_1, %c0_2] : memref<128x128xbf16, #tpu.memory_space<vmem>>, vector<128x128xbf16>
    %cst = arith.constant dense<0.000000e+00> : vector<128x128xf32>
    %2 = tpu.matmul %0, %1, %cst {dimension_numbers = #tpu.dot_dimension_numbers<[1], [0], [0], [1], [0, 0, 1, 1], [], []>} : vector<128x128xbf16>, vector<128x128xbf16>, vector<128x128xf32> -> vector<128x128xf32>
    %3 = arith.truncf %2 : vector<128x128xf32> to vector<128x128xbf16>
    %c0_3 = arith.constant 0 : index
    %c0_4 = arith.constant 0 : index
    %4 = vector.load %arg3[%c0_3, %c0_4] : memref<128x128xbf16, #tpu.memory_space<vmem>>, vector<128x128xbf16>
    tpu.vector_store %arg3[%c0_3, %c0_4], %3 {strides = array<i32>} : memref<128x128xbf16, #tpu.memory_space<vmem>>, vector<128x128xbf16>,
    return
  }
  func.func @transform_0(%arg0: i32) -> (i32, i32) {
    %c0_i32 = arith.constant 0 : i32
    %c0_i32_0 = arith.constant 0 : i32
    return %arg0, %c0_i32 : i32, i32
  }
  func.func @transform_1(%arg0: i32) -> (i32, i32) {
    %c0_i32 = arith.constant 0 : i32
    %c0_i32_0 = arith.constant 0 : i32
    %c0_i32_1 = arith.constant 0 : i32
    return %c0_i32, %c0_i32_0 : i32, i32
  }
  func.func @transform_2(%arg0: i32) -> (i32, i32) {
    %c0_i32 = arith.constant 0 : i32
    %c0_i32_0 = arith.constant 0 : i32
    return %arg0, %c0_i32 : i32, i32
  }
}

</mosaic_0001>

<bundles_post_ra>
// kernel: tpu_custom_call.1
= control target key start
LH: loop header
LB: loop body
LE: loop exit
PB: predicated region body
PF: predicated region fallthrough
CT: control target
= control target key end

     0   :  { %7 = vsyncpa [#allocation3], 0  ;;  %s648_s0 = inlined_call_operand.hbm [shape: bf16[128,128], index: 0, kind: input, shape index: {}]   ;;  %s649_s1 = inlined_call_operand.hbm [shape: bf16[128,128], index: 1, kind: input, shape index: {}]   ;;  %s650_s2 = inlined_call_operand.hbm [shape: bf16[128,128], index: 2, kind: output, shape index: {}]  }
   0x1   :  { %8 = vsyncpa [#allocation6], 0 }
   0x2   :  { %9 = vsyncpa [#allocation4], 0  ;;  %s610_s9 = smov [#allocation2]  }
   0x3   :  { %s15_s10 = sshll.u32 %s610_s9, 4  ;;  %s16_s10 = int_to_ptr.vmem [resolvable:$true] %s15_s10 }
   0x4   :  { %s552_s11 = scalar_lea.vmem %s16_s10, 1024  ;;  %p557_p1 = scmp.lt.s32.totalorder %s16_s10, %s16_s10 }
   0x5   :  { %p553_p0 = scmp.ne.s32.totalorder %s16_s10, %s552_s11  ;;  %p558_p2 = scmp.lt.s32.totalorder %s552_s11, %s552_s11 }
   0x7   :  { %p559_p3 = por %p558_p2, %p557_p1 }
   0x9   :  { %p560_p4 = pnand %p559_p3, %p553_p0 }
   0xb   :  { %563 = shalt.err (!%p560_p4)
}
   0xc   :  { %s611_s12 = smov 64   ;;  %s612_s13 = smov 4  }
   0xd   :  { %21 = dma.hbm_to_vmem [thread:$0]  %s648_s0, 1024, %s16_s10, [#allocation3], %s611_s12, %s611_s12, %s612_s13  }
   0xe   :  { %s613_s16 = smov [#allocation5]  }
   0xf   :  { %s27_s17 = sshll.u32 %s613_s16, 4  ;;  %s28_s17 = int_to_ptr.vmem [resolvable:$true] %s27_s17 }
  0x10   :  { %s572_s18 = scalar_lea.vmem %s28_s17, 1024  ;;  %p577_p6 = scmp.lt.s32.totalorder %s28_s17, %s28_s17 }
  0x11   :  { %p573_p5 = scmp.ne.s32.totalorder %s28_s17, %s572_s18  ;;  %p578_p7 = scmp.lt.s32.totalorder %s572_s18, %s572_s18 }
  0x13   :  { %p579_p8 = por %p578_p7, %p577_p6 }
  0x15   :  { %p580_p9 = pnand %p579_p8, %p573_p5 }
  0x17   :  { %583 = shalt.err (!%p580_p9)
}
  0x18   :  { %33 = dma.hbm_to_vmem [thread:$0]  %s649_s1, 1024, %s28_s17, [#allocation6], %s611_s12, %s611_s12, %s612_s13  }
  0x19   :  { %604 = dma.done.wait [#allocation3], 1024  }
  0x1a   :  { %605 = vsyncadd [#allocation3], 4294966272 }
  0x1b   :  { %606 = dma.done.wait [#allocation6], 1024  }
  0x1c   :  { %607 = vsyncadd [#allocation6], 4294966272  ;;  %v528_v0 = vld [vmem:[#allocation5 + $0x38] sm:$0xff]   ;;  %v529_v1 = vld [vmem:[#allocation5 + $0x30] sm:$0xff]   ;;  %s614_s0 = smov [#allocation7]  }
  0x1d   :  { %475 = vmatprep.subr.bf16.mxu0 %v528_v0  ;;  %507 = vmatprep.subr.bf16.mxu1 %v528_v0  ;;  %v530_v2 = vld [vmem:[#allocation5 + $0x28] sm:$0xff]   ;;  %v531_v3 = vld [vmem:[#allocation5 + $0x20] sm:$0xff]   ;;  %v532_v6 = vld [vmem:[#allocation5 + $0x18] sm:$0xff]   ;;  %s351_s1 = sshll.u32 %s614_s0, 4  ;;  %s352_s1 = int_to_ptr.vmem [resolvable:$true] %s351_s1 }
  0x1e   :  { %476 = vmatpush3.bf16.msra.mxu0 %v528_v0  ;;  %515 = vmatpush3.bf16.msra.mxu1 %v528_v0  ;;  %v536_v4 = vld [vmem:[#allocation2] sm:$0xff]   ;;  %v533_v7 = vld [vmem:[#allocation5 + $0x10] sm:$0xff]   ;;  %v534_v8 = vld [vmem:[#allocation5 + $0x8] sm:$0xff]   ;;  %s584_s21 = scalar_lea.vmem %s352_s1, 1024  ;;  %p589_p11 = scmp.lt.s32.totalorder %s352_s1, %s352_s1 }
  0x1f   :  { %477 = vmatprep.subr.bf16.mxu0 %v529_v1  ;;  %508 = vmatprep.subr.bf16.mxu1 %v529_v1  ;;  %v537_v5 = vld [vmem:[#allocation2 + $0x20] sm:$0xff]   ;;  %v538_v10 = vld [vmem:[#allocation2 + $0x8] sm:$0xff]   ;;  %v540_v12 = vld [vmem:[#allocation2 + $0x10] sm:$0xff]   ;;  %p585_p10 = scmp.ne.s32.totalorder %s352_s1, %s584_s21  ;;  %p590_p12 = scmp.lt.s32.totalorder %s584_s21, %s584_s21 }
  0x20   :  { %491 = vmatprep.mubr.bf16.mxu0 %v536_v4  ;;  %499 = vmatprep.mubr.bf16.mxu1 %v537_v5  ;;  %v535_v9 = vld [vmem:[#allocation5] sm:$0xff]   ;;  %v539_v11 = vld [vmem:[#allocation2 + $0x28] sm:$0xff]   ;;  %v541_v13 = vld [vmem:[#allocation2 + $0x30] sm:$0xff]  }
  0x21   :  { %v542_v14 = vld [vmem:[#allocation2 + $0x18] sm:$0xff]   ;;  %p591_p13 = por %p590_p12, %p589_p11 }
  0x22   :  { %478 = vmatpush3.bf16.msra.mxu0 %v529_v1  ;;  %516 = vmatpush3.bf16.msra.mxu1 %v529_v1  ;;  %v543_v15 = vld [vmem:[#allocation2 + $0x38] sm:$0xff]  }
  0x23   :  { %479 = vmatprep.subr.bf16.mxu0 %v530_v2  ;;  %509 = vmatprep.subr.bf16.mxu1 %v530_v2  ;;  %p592_p0 = pnand %p591_p13, %p585_p10 }
  0x26   :  { %480 = vmatpush3.bf16.msra.mxu0 %v530_v2  ;;  %517 = vmatpush3.bf16.msra.mxu1 %v530_v2 }
  0x27   :  { %481 = vmatprep.subr.bf16.mxu0 %v531_v3  ;;  %510 = vmatprep.subr.bf16.mxu1 %v531_v3 }
  0x2a   :  { %482 = vmatpush3.bf16.msra.mxu0 %v531_v3  ;;  %518 = vmatpush3.bf16.msra.mxu1 %v531_v3 }
  0x2b   :  { %483 = vmatprep.subr.bf16.mxu0 %v532_v6  ;;  %511 = vmatprep.subr.bf16.mxu1 %v532_v6 }
  0x2e   :  { %484 = vmatpush3.bf16.msra.mxu0 %v532_v6  ;;  %519 = vmatpush3.bf16.msra.mxu1 %v532_v6 }
  0x2f   :  { %485 = vmatprep.subr.bf16.mxu0 %v533_v7  ;;  %512 = vmatprep.subr.bf16.mxu1 %v533_v7 }
  0x32   :  { %486 = vmatpush3.bf16.msra.mxu0 %v533_v7  ;;  %520 = vmatpush3.bf16.msra.mxu1 %v533_v7 }
  0x33   :  { %487 = vmatprep.subr.bf16.mxu0 %v534_v8  ;;  %513 = vmatprep.subr.bf16.mxu1 %v534_v8 }
  0x36   :  { %488 = vmatpush3.bf16.msra.mxu0 %v534_v8  ;;  %521 = vmatpush3.bf16.msra.mxu1 %v534_v8 }
  0x37   :  { %489 = vmatprep.subr.bf16.mxu0 %v535_v9  ;;  %514 = vmatprep.subr.bf16.mxu1 %v535_v9 }
  0x3a   :  { %490 = vmatpush3.bf16.msra.mxu0 %v535_v9  ;;  %522 = vmatpush3.bf16.msra.mxu1 %v535_v9 }
  0x3d   :  { %492 = vmatmul.mubr.bf16.vlgmr.msra.gmra.mxu0 %v538_v10  ;;  %500 = vmatmul.mubr.bf16.vlgmr.msra.gmra.mxu1 %v539_v11 }
  0x3e   :  { %495 = vmatprep.mubr.bf16.mxu0 %v540_v12  ;;  %503 = vmatprep.mubr.bf16.mxu1 %v541_v13 }
  0x45   :  { %496 = vmatmul.mubr.bf16.gmra.mxu0 %v542_v14  ;;  %504 = vmatmul.mubr.bf16.gmra.mxu1 %v543_v15 }
  0xfd   :  { %v493_v16 = vpop.f32.mrf.mxu0  ;;  %v501_v17 = vpop.f32.mrf.mxu1 }
  0xff   :  { %v203_v18 = vpop.f32.mrf.mxu0  ;;  %v235_v19 = vpop.f32.mrf.mxu1 }
 0x101   :  { %v494_v20 = vpop.f32.mrf.mxu0  ;;  %v502_v21 = vpop.f32.mrf.mxu1 }
 0x102   :  { %v420_v22 = vpack.c.bf16 %v494_v20, %v493_v16  ;;  %v440_v23 = vpack.c.bf16 %v502_v21, %v501_v17 }
 0x103   :  { %v206_v24 = vpop.f32.mrf.mxu0  ;;  %v238_v25 = vpop.f32.mrf.mxu1 }
 0x104   :  { %452 = vst [vmem:[#allocation7 + $0x8] sm:$0xff] %v420_v22   ;;  %456 = vst [vmem:[#allocation7 + $0x28] sm:$0xff] %v440_v23   ;;  %v415_v26 = vpack.c.bf16 %v206_v24, %v203_v18  ;;  %v435_v27 = vpack.c.bf16 %v238_v25, %v235_v19 }
 0x105   :  { %v497_v28 = vpop.f32.mrf.mxu0  ;;  %v505_v29 = vpop.f32.mrf.mxu1 }
 0x106   :  { %416 = vst [vmem:[#allocation7] sm:$0xff] %v415_v26   ;;  %455 = vst [vmem:[#allocation7 + $0x20] sm:$0xff] %v435_v27  }
 0x107   :  { %v219_v30 = vpop.f32.mrf.mxu0  ;;  %v251_v31 = vpop.f32.mrf.mxu1 }
 0x109   :  { %v498_v32 = vpop.f32.mrf.mxu0  ;;  %v506_v33 = vpop.f32.mrf.mxu1 }
 0x10a   :  { %v430_v34 = vpack.c.bf16 %v498_v32, %v497_v28  ;;  %v450_v35 = vpack.c.bf16 %v506_v33, %v505_v29 }
 0x10b   :  { %v222_v36 = vpop.f32.mrf.mxu0  ;;  %v254_v37 = vpop.f32.mrf.mxu1 }
 0x10c   :  { %454 = vst [vmem:[#allocation7 + $0x18] sm:$0xff] %v430_v34   ;;  %458 = vst [vmem:[#allocation7 + $0x38] sm:$0xff] %v450_v35   ;;  %v425_v38 = vpack.c.bf16 %v222_v36, %v219_v30  ;;  %v445_v39 = vpack.c.bf16 %v254_v37, %v251_v31 }
 0x10e   :  { %453 = vst [vmem:[#allocation7 + $0x10] sm:$0xff] %v425_v38   ;;  %457 = vst [vmem:[#allocation7 + $0x30] sm:$0xff] %v445_v39  }
 0x10f   :  { %595 = shalt.err (!%p592_p0)
}
 0x110   :  { %357 = dma.vmem_to_hbm [thread:$0]  %s352_s1, 1024, %s650_s2, [#allocation4], %s611_s12, %s611_s12, %s612_s13  }
 0x111   :  { %608 = dma.done.wait [#allocation4], 1024  }
 0x112   :  { %609 = vsyncadd [#allocation4], 4294966272 }
 0x113   :  { %361 = vsyncpa [#allocation3], 1 }
 0x114   :  { %362 = vsyncpa [#allocation6], 1 }
 0x115   :  { %363 = vsyncpa [#allocation4], 1 }

</bundles_post_ra>
